<compile_context>
chip_gen: v7x
topology: tpu7x:2x2x1
jax: 0.10.0
libtpu: 0.0.40
codegen_flags: <defaults>
</compile_context>

<pallas_src>
import functools

import jax
import jax.numpy as jnp
from jax.experimental import pallas as pl
from jax.experimental.pallas import tpu as pltpu


def _round_up(n, m):
    return ((n + m - 1) // m) * m


def _pad2(a, rows, cols):
    return jnp.pad(a, ((0, rows - a.shape[0]), (0, cols - a.shape[1])))


def _supports_pipeline_mode():
    if not hasattr(pl, "Buffered"):
        return False
    try:
        pl.BlockSpec((8, 128), lambda i: (0, 0), pipeline_mode=pl.Buffered(1))
        return True
    except Exception:
        return False


_HAS_BUFFERED = _supports_pipeline_mode()


def _vmem_capacity_bytes():
    try:
        return int(pltpu.get_tpu_info().vmem_capacity_bytes)
    except Exception:
        return 64 << 20  # conservative (v7x per-TC VMEM)


def _use_bf16_elementwise():
    # packed-bf16 VALU ops exist on v6e/v7x only; keep f32 elementwise on v5e and older.
    try:
        kind = jax.devices()[0].device_kind.lower()
    except Exception:
        kind = ""
    return ("v6" in kind) or ("v7" in kind)


def _vae_kernel(nan_ref,                       # scalar prefetch: (1,) int32 whole-tensor NaN flag
                x_ref, y_ref, e_ref,           # streamed per batch tile (bf16)
                w_enc_ref, b_enc_ref,          # resident weights (bf16) / biases (f32)
                w_ml_ref, b_ml_ref,            # fused mu|logvar projection
                w_yo_ref, b_yo_ref,
                w_dec_ref, b_dec_ref,
                w_rec_ref, b_rec_ref,
                x_out_ref, y_out_ref, kl_ref,
                *, bf16_elementwise):
    bf16 = jnp.bfloat16
    f32 = jnp.float32
    lat_p = e_ref.shape[-1]

    # ---- core(x, None, e, fpd='f'): encode + reparameterize + output head ----
    h = jnp.dot(x_ref[...], w_enc_ref[...],
                preferred_element_type=f32) + b_enc_ref[...]           # (TB, hid_p) f32
    if bf16_elementwise:
        h = jnp.maximum(h.astype(bf16), bf16(0.0))                     # packed-bf16 ReLU
    else:
        h = jnp.maximum(h, 0.0).astype(bf16)

    ml = jnp.dot(h, w_ml_ref[...],
                 preferred_element_type=f32) + b_ml_ref[...]           # (TB, 2*lat_p) f32
    mu = ml[:, :lat_p]
    lv = ml[:, lat_p:]

    std = jnp.exp(0.5 * lv)                                            # one EUP exp; std*std == exp(lv)
    z = mu + std * e_ref[...].astype(f32)                              # reparameterization in f32

    y_hat = jnp.dot(z.astype(bf16), w_yo_ref[...],
                    preferred_element_type=f32) + b_yo_ref[...]        # (TB, out_p) f32
    y_out_ref[...] = y_hat

    # per-row KL partials; padded latent columns contribute exactly 0 (mu=lv=0).
    # Broadcast over 128 lanes so the store is a full, unmasked vst.
    kl_row = -0.5 * jnp.sum(1.0 + lv - mu * mu - std * std,
                            axis=-1, keepdims=True)                    # (TB, 1)
    kl_ref[...] = jnp.broadcast_to(kl_row, kl_ref.shape)               # (TB, 128)

    # ---- y = y_ if isnan(y).any() else y.squeeze(dim=2) ----
    # whole-tensor NaN reduce hoisted to the wrapper, passed as a scalar flag.
    has_nan = nan_ref[0] != 0
    if bf16_elementwise:
        y_use = jnp.where(has_nan, y_hat.astype(bf16), y_ref[...])     # bf16 select
    else:
        y_use = jnp.where(has_nan, y_hat, y_ref[...].astype(f32)).astype(bf16)

    # ---- core(None, y, e, fpd='b'): decode ----
    hd = jnp.dot(y_use, w_dec_ref[...],
                 preferred_element_type=f32) + b_dec_ref[...]          # (TB, hid_p) f32
    if bf16_elementwise:
        hd = jnp.maximum(hd.astype(bf16), bf16(0.0))
    else:
        hd = jnp.maximum(hd, 0.0).astype(bf16)
    x_out_ref[...] = jnp.dot(hd, w_rec_ref[...],
                             preferred_element_type=f32) + b_rec_ref[...]


def pack_params(params):
    """Pad / fuse / cast the VAE weights ONCE (call outside the hot path)."""
    in_dim, hidden = params["w_enc"].shape
    latent = params["w_mu"].shape[1]
    out_dim = params["w_yo"].shape[1]

    in_p = _round_up(in_dim, 128)
    out_p = _round_up(out_dim, 128)
    hid_p = _round_up(hidden, 128)
    lat_p = _round_up(latent, 128)

    bf16, f32 = jnp.bfloat16, jnp.float32
    w_enc = _pad2(params["w_enc"], in_p, hid_p).astype(bf16)
    b_enc = _pad2(params["b_enc"], 1, hid_p).astype(f32)
    w_ml = jnp.concatenate([_pad2(params["w_mu"], hid_p, lat_p),
                            _pad2(params["w_lv"], hid_p, lat_p)], axis=1).astype(bf16)
    b_ml = jnp.concatenate([_pad2(params["b_mu"], 1, lat_p),
                            _pad2(params["b_lv"], 1, lat_p)], axis=1).astype(f32)
    w_yo = _pad2(params["w_yo"], lat_p, out_p).astype(bf16)
    b_yo = _pad2(params["b_yo"], 1, out_p).astype(f32)
    w_dec = _pad2(params["w_dec"], out_p, hid_p).astype(bf16)
    b_dec = _pad2(params["b_dec"], 1, hid_p).astype(f32)
    w_rec = _pad2(params["w_rec"], hid_p, in_p).astype(bf16)
    b_rec = _pad2(params["b_rec"], 1, in_p).astype(f32)

    return {
        "weights": (w_enc, b_enc, w_ml, b_ml, w_yo, b_yo, w_dec, b_dec, w_rec, b_rec),
        "dims": (in_dim, out_dim, hidden, latent),
        "padded": (in_p, out_p, hid_p, lat_p),
    }


def pepper_net_vae_forward(x, y, e, packed, *, batch_tile=None):
    """x: (B, in_), y: (B, out_, 1), e: (B, latent). Returns (x_, y_, kl)."""
    in_dim, out_dim, hidden, latent = packed["dims"]
    in_p, out_p, hid_p, lat_p = packed["padded"]
    weights = packed["weights"]
    bf16 = jnp.bfloat16

    B = x.shape[0]
    y2 = jnp.squeeze(y, axis=2)                                        # shape plumbing

    # batch-tile policy: big tiles for large B (amortize ~0.35us/step), and >=2 tiles
    # whenever possible so v7x's two TensorCores both get work ("parallel" grid axis).
    if batch_tile is None:
        if B >= 1024:
            batch_tile = 512            # TODO(sweep): try 1024 on v5e/v6e (128 MiB VMEM)
        elif B >= 16:
            batch_tile = _round_up(pl.cdiv(B, 2), 8)
        else:
            batch_tile = _round_up(max(B, 1), 8)
    TB = batch_tile
    B_p = _round_up(B, TB)
    n_tiles = B_p // TB

    # streamed activations in bf16 (halves HBM read traffic); zero padding keeps
    # padded rows/cols inert.  f32->bf16 preserves NaN, so the flag computed from yp
    # (fusable with the pad/cast) matches torch.isnan(y).any().
    xp = _pad2(x.astype(bf16), B_p, in_p)
    yp = _pad2(y2.astype(bf16), B_p, out_p)
    ep = _pad2(e.astype(bf16), B_p, lat_p)
    has_nan = jnp.any(jnp.isnan(yp)).astype(jnp.int32).reshape((1,))

    use_bf16_ew = _use_bf16_elementwise()
    kernel = functools.partial(_vae_kernel, bf16_elementwise=use_bf16_ew)

    def stream_spec(cols):
        return pl.BlockSpec((TB, cols), lambda i, nan: (i, 0))

    def resident_spec(a):
        r, c = a.shape
        if _HAS_BUFFERED:
            # constant index_map -> never re-DMA'd; single buffer halves resident VMEM.
            return pl.BlockSpec((r, c), lambda i, nan: (0, 0),
                                pipeline_mode=pl.Buffered(1))
        return pl.BlockSpec((r, c), lambda i, nan: (0, 0))

    in_specs = [stream_spec(in_p), stream_spec(out_p), stream_spec(lat_p)]
    in_specs += [resident_spec(w) for w in weights]

    out_specs = (
        pl.BlockSpec((TB, in_p), lambda i, nan: (i, 0)),
        pl.BlockSpec((TB, out_p), lambda i, nan: (i, 0)),
        pl.BlockSpec((TB, 128), lambda i, nan: (i, 0)),                # lane-dense KL slab
    )
    out_shape = (
        jax.ShapeDtypeStruct((B_p, in_p), jnp.float32),
        jax.ShapeDtypeStruct((B_p, out_p), jnp.float32),
        jax.ShapeDtypeStruct((B_p, 128), jnp.float32),
    )

    # VMEM budget: single-buffered residents (when supported), double-buffered bf16
    # streams, double-buffered f32 outputs, plus headroom; generation-aware cap at
    # 7/8 of physical VMEM (~56 MiB v7x, ~112 MiB v5e/v6e).
    def _nbytes(a):
        return a.size * a.dtype.itemsize
    resident_mult = 1 if _HAS_BUFFERED else 2
    resident_bytes = sum(_nbytes(w) for w in weights)
    stream_bytes = 2 * 2 * TB * (in_p + out_p + lat_p)                 # 2 bufs x bf16
    out_bytes = 2 * 4 * TB * (in_p + out_p + 128)                      # 2 bufs x f32
    vmem_cap = (_vmem_capacity_bytes() * 7) // 8
    vmem_limit = int(max(16 << 20,
                         min(resident_mult * resident_bytes + stream_bytes + out_bytes
                             + (8 << 20), vmem_cap)))

    # cost estimate from REAL (unpadded) dims so XLA's scheduler isn't misled.
    flops = 2 * B * (in_dim * hidden + hidden * 2 * latent + latent * out_dim
                     + out_dim * hidden + hidden * in_dim)
    transcendentals = B * latent
    bytes_accessed = (2 * (in_dim * hidden + hidden * 2 * latent + latent * out_dim
                           + out_dim * hidden + hidden * in_dim)       # bf16 weights
                      + 2 * B * (in_dim + out_dim + latent)            # bf16 activations in
                      + 4 * B * (in_dim + out_dim + 1))                # f32 outputs

    x_out_p, y_out_p, kl_rows = pl.pallas_call(
        kernel,
        out_shape=out_shape,
        grid_spec=pltpu.PrefetchScalarGridSpec(
            num_scalar_prefetch=1,
            grid=(n_tiles,),
            in_specs=in_specs,
            out_specs=out_specs),
        compiler_params=pltpu.CompilerParams(
            dimension_semantics=("parallel",),
            vmem_limit_bytes=vmem_limit),
        cost_estimate=pl.CostEstimate(
            flops=int(flops),
            transcendentals=int(transcendentals),
            bytes_accessed=int(bytes_accessed)),
    )(has_nan, xp, yp, ep, *weights)

    x_rec = x_out_p[:B, :in_dim]
    y_hat = y_out_p[:B, :out_dim]
    kl = jnp.sum(kl_rows[:B, 0])        # per-row partials summed here (batch-pad rows dropped)
    return x_rec, y_hat, kl


def init_params(key, in_dim, out_dim, hidden, latent):
    ks = jax.random.split(key, 6)
    s = 0.1
    return {
        "w_enc": s * jax.random.normal(ks[0], (in_dim, hidden), jnp.float32),
        "b_enc": jnp.zeros((1, hidden), jnp.float32),
        "w_mu":  s * jax.random.normal(ks[1], (hidden, latent), jnp.float32),
        "b_mu":  jnp.zeros((1, latent), jnp.float32),
        "w_lv":  s * jax.random.normal(ks[2], (hidden, latent), jnp.float32),
        "b_lv":  jnp.zeros((1, latent), jnp.float32),
        "w_yo":  s * jax.random.normal(ks[3], (latent, out_dim), jnp.float32),
        "b_yo":  jnp.zeros((1, out_dim), jnp.float32),
        "w_dec": s * jax.random.normal(ks[4], (out_dim, hidden), jnp.float32),
        "b_dec": jnp.zeros((1, hidden), jnp.float32),
        "w_rec": s * jax.random.normal(ks[5], (hidden, in_dim), jnp.float32),
        "b_rec": jnp.zeros((1, in_dim), jnp.float32),
    }


def _reference_forward(x, y, e, params):
    """Pure-JAX f32 reference matching the kernel/module semantics."""
    y2 = jnp.squeeze(y, axis=2)
    h = jax.nn.relu(x @ params["w_enc"] + params["b_enc"])
    mu = h @ params["w_mu"] + params["b_mu"]
    lv = h @ params["w_lv"] + params["b_lv"]
    std = jnp.exp(0.5 * lv)
    z = mu + std * e
    y_hat = z @ params["w_yo"] + params["b_yo"]
    kl = -0.5 * jnp.sum(1.0 + lv - mu * mu - jnp.exp(lv))
    y_use = jnp.where(jnp.any(jnp.isnan(y2)), y_hat, y2)
    hd = jax.nn.relu(y_use @ params["w_dec"] + params["b_dec"])
    x_rec = hd @ params["w_rec"] + params["b_rec"]
    return x_rec, y_hat, kl


if __name__ == "__main__":
    B, in_dim, out_dim, hidden, latent = 16, 16, 8, 32, 16

    root = jax.random.PRNGKey(0)
    k_x, k_y, k_e, k_p = jax.random.split(root, 4)

    x = jax.random.normal(k_x, (B, in_dim), jnp.float32)
    y = jax.random.normal(k_y, (B, out_dim, 1), jnp.float32)   # extra dim=2 squeezed in forward
    e = jax.random.normal(k_e, (B, latent), jnp.float32)

    params = init_params(k_p, in_dim, out_dim, hidden, latent)
    packed = pack_params(params)                                # pre-pack once, off the hot path
    jax.block_until_ready(packed["weights"])

    x_rec, y_pred, kl = pepper_net_vae_forward(x, y, e, packed)
    jax.block_until_ready((x_rec, y_pred, kl))

    assert x_rec.shape == (B, in_dim)
    assert y_pred.shape == (B, out_dim)
    assert kl.shape == ()
    assert bool(jnp.all(jnp.isfinite(x_rec))) and bool(jnp.all(jnp.isfinite(y_pred)))
    assert bool(jnp.isfinite(kl))

    # numerical check vs f32 reference (bf16 MXU/streaming -> loose tolerance)
    x_ref, y_ref, kl_ref = _reference_forward(x, y, e, params)
    assert bool(jnp.allclose(x_rec, x_ref, atol=1e-1, rtol=1e-1))
    assert bool(jnp.allclose(y_pred, y_ref, atol=1e-1, rtol=1e-1))
    assert bool(jnp.allclose(kl, kl_ref, atol=5e-1, rtol=1e-1))

    print("KERNEL_OK")
</pallas_src>

<mosaic_0001>
module attributes {stable_mosaic.version = 11 : i64} {
  func.func @_vae_kernel(%arg0: i32, %arg1: memref<1xi32, #tpu.memory_space<smem>>, %arg2: memref<8x128xbf16, #tpu.memory_space<vmem>>, %arg3: memref<8x128xbf16, #tpu.memory_space<vmem>>, %arg4: memref<8x128xbf16, #tpu.memory_space<vmem>>, %arg5: memref<128x128xbf16, #tpu.memory_space<vmem>>, %arg6: memref<1x128xf32, #tpu.memory_space<vmem>>, %arg7: memref<128x256xbf16, #tpu.memory_space<vmem>>, %arg8: memref<1x256xf32, #tpu.memory_space<vmem>>, %arg9: memref<128x128xbf16, #tpu.memory_space<vmem>>, %arg10: memref<1x128xf32, #tpu.memory_space<vmem>>, %arg11: memref<128x128xbf16, #tpu.memory_space<vmem>>, %arg12: memref<1x128xf32, #tpu.memory_space<vmem>>, %arg13: memref<128x128xbf16, #tpu.memory_space<vmem>>, %arg14: memref<1x128xf32, #tpu.memory_space<vmem>>, %arg15: memref<8x128xf32, #tpu.memory_space<vmem>>, %arg16: memref<8x128xf32, #tpu.memory_space<vmem>>, %arg17: memref<8x128xf32, #tpu.memory_space<vmem>>) attributes {dimension_semantics = [#tpu.dimension_semantics<parallel>], iteration_bounds = array<i64: 2>, scalar_prefetch = 1 : i64, scratch_operands = 0 : i64, tpu.core_type = #tpu.core_type<tc>, window_params = [{transform_indices = @transform_0, window_bounds = array<i64: 8, 128>}, {transform_indices = @transform_1, window_bounds = array<i64: 8, 128>}, {transform_indices = @transform_2, window_bounds = array<i64: 8, 128>}, {pipeline_mode = #tpu.pipeline_mode<synchronous>, transform_indices = @transform_3, window_bounds = array<i64: 128, 128>}, {pipeline_mode = #tpu.pipeline_mode<synchronous>, transform_indices = @transform_4, window_bounds = array<i64: 1, 128>}, {pipeline_mode = #tpu.pipeline_mode<synchronous>, transform_indices = @transform_5, window_bounds = array<i64: 128, 256>}, {pipeline_mode = #tpu.pipeline_mode<synchronous>, transform_indices = @transform_6, window_bounds = array<i64: 1, 256>}, {pipeline_mode = #tpu.pipeline_mode<synchronous>, transform_indices = @transform_7, window_bounds = array<i64: 128, 128>}, {pipeline_mode = #tpu.pipeline_mode<synchronous>, transform_indices = @transform_8, window_bounds = array<i64: 1, 128>}, {pipeline_mode = #tpu.pipeline_mode<synchronous>, transform_indices = @transform_9, window_bounds = array<i64: 128, 128>}, {pipeline_mode = #tpu.pipeline_mode<synchronous>, transform_indices = @transform_10, window_bounds = array<i64: 1, 128>}, {pipeline_mode = #tpu.pipeline_mode<synchronous>, transform_indices = @transform_11, window_bounds = array<i64: 128, 128>}, {pipeline_mode = #tpu.pipeline_mode<synchronous>, transform_indices = @transform_12, window_bounds = array<i64: 1, 128>}, {transform_indices = @transform_13, window_bounds = array<i64: 8, 128>}, {transform_indices = @transform_14, window_bounds = array<i64: 8, 128>}, {transform_indices = @transform_15, window_bounds = array<i64: 8, 128>}]} {
    %c0 = arith.constant 0 : index
    %c0_0 = arith.constant 0 : index
    %0 = vector.load %arg2[%c0, %c0_0] : memref<8x128xbf16, #tpu.memory_space<vmem>>, vector<8x128xbf16>
    %c0_1 = arith.constant 0 : index
    %c0_2 = arith.constant 0 : index
    %1 = vector.load %arg5[%c0_1, %c0_2] : memref<128x128xbf16, #tpu.memory_space<vmem>>, vector<128x128xbf16>
    %cst = arith.constant dense<0.000000e+00> : vector<8x128xf32>
    %2 = tpu.matmul %0, %1, %cst {dimension_numbers = #tpu.dot_dimension_numbers<[1], [0], [0], [1], [0, 0, 1, 1], [], []>} : vector<8x128xbf16>, vector<128x128xbf16>, vector<8x128xf32> -> vector<8x128xf32>
    %c0_3 = arith.constant 0 : index
    %c0_4 = arith.constant 0 : index
    %3 = vector.load %arg6[%c0_3, %c0_4] : memref<1x128xf32, #tpu.memory_space<vmem>>, vector<1x128xf32>
    %4 = vector.broadcast %3 : vector<1x128xf32> to vector<8x128xf32>
    %5 = arith.addf %2, %4 : vector<8x128xf32>
    %cst_5 = arith.constant 0.000000e+00 : f32
    %6 = vector.broadcast %cst_5 : f32 to vector<8x128xf32>
    %7 = arith.maximumf %5, %6 : vector<8x128xf32>
    %8 = arith.truncf %7 : vector<8x128xf32> to vector<8x128xbf16>
    %c0_6 = arith.constant 0 : index
    %c0_7 = arith.constant 0 : index
    %9 = vector.load %arg7[%c0_6, %c0_7] : memref<128x256xbf16, #tpu.memory_space<vmem>>, vector<128x256xbf16>
    %cst_8 = arith.constant dense<0.000000e+00> : vector<8x256xf32>
    %10 = tpu.matmul %8, %9, %cst_8 {dimension_numbers = #tpu.dot_dimension_numbers<[1], [0], [0], [1], [0, 0, 1, 1], [], []>} : vector<8x128xbf16>, vector<128x256xbf16>, vector<8x256xf32> -> vector<8x256xf32>
    %c0_9 = arith.constant 0 : index
    %c0_10 = arith.constant 0 : index
    %11 = vector.load %arg8[%c0_9, %c0_10] : memref<1x256xf32, #tpu.memory_space<vmem>>, vector<1x256xf32>
    %12 = vector.broadcast %11 : vector<1x256xf32> to vector<8x256xf32>
    %13 = arith.addf %10, %12 : vector<8x256xf32>
    %14 = vector.extract_strided_slice %13 {offsets = [0, 0], sizes = [8, 128], strides = [1, 1]} : vector<8x256xf32> to vector<8x128xf32>
    %15 = vector.extract_strided_slice %13 {offsets = [0, 128], sizes = [8, 128], strides = [1, 1]} : vector<8x256xf32> to vector<8x128xf32>
    %cst_11 = arith.constant 5.000000e-01 : f32
    %16 = vector.broadcast %cst_11 : f32 to vector<8x128xf32>
    %17 = arith.mulf %16, %15 : vector<8x128xf32>
    %18 = math.exp %17 : vector<8x128xf32>
    %c0_12 = arith.constant 0 : index
    %c0_13 = arith.constant 0 : index
    %19 = vector.load %arg4[%c0_12, %c0_13] : memref<8x128xbf16, #tpu.memory_space<vmem>>, vector<8x128xbf16>
    %20 = arith.extf %19 : vector<8x128xbf16> to vector<8x128xf32>
    %21 = arith.mulf %18, %20 : vector<8x128xf32>
    %22 = arith.addf %14, %21 : vector<8x128xf32>
    %23 = arith.truncf %22 : vector<8x128xf32> to vector<8x128xbf16>
    %c0_14 = arith.constant 0 : index
    %c0_15 = arith.constant 0 : index
    %24 = vector.load %arg9[%c0_14, %c0_15] : memref<128x128xbf16, #tpu.memory_space<vmem>>, vector<128x128xbf16>
    %cst_16 = arith.constant dense<0.000000e+00> : vector<8x128xf32>
    %25 = tpu.matmul %23, %24, %cst_16 {dimension_numbers = #tpu.dot_dimension_numbers<[1], [0], [0], [1], [0, 0, 1, 1], [], []>} : vector<8x128xbf16>, vector<128x128xbf16>, vector<8x128xf32> -> vector<8x128xf32>
    %c0_17 = arith.constant 0 : index
    %c0_18 = arith.constant 0 : index
    %26 = vector.load %arg10[%c0_17, %c0_18] : memref<1x128xf32, #tpu.memory_space<vmem>>, vector<1x128xf32>
    %27 = vector.broadcast %26 : vector<1x128xf32> to vector<8x128xf32>
    %28 = arith.addf %25, %27 : vector<8x128xf32>
    %c0_19 = arith.constant 0 : index
    %c0_20 = arith.constant 0 : index
    %29 = vector.load %arg16[%c0_19, %c0_20] : memref<8x128xf32, #tpu.memory_space<vmem>>, vector<8x128xf32>
    tpu.vector_store %arg16[%c0_19, %c0_20], %28 {strides = array<i32>} : memref<8x128xf32, #tpu.memory_space<vmem>>, vector<8x128xf32>,
    %cst_21 = arith.constant 1.000000e+00 : f32
    %30 = vector.broadcast %cst_21 : f32 to vector<8x128xf32>
    %31 = arith.addf %30, %15 : vector<8x128xf32>
    %32 = arith.mulf %14, %14 : vector<8x128xf32>
    %33 = arith.subf %31, %32 : vector<8x128xf32>
    %34 = arith.mulf %18, %18 : vector<8x128xf32>
    %35 = arith.subf %33, %34 : vector<8x128xf32>
    %cst_22 = arith.constant dense<0.000000e+00> : vector<8xf32>
    %36 = vector.multi_reduction <add>, %35, %cst_22 [1] : vector<8x128xf32> to vector<8xf32>
    %37 = vector.shape_cast %36 : vector<8xf32> to vector<8x1xf32>
    %cst_23 = arith.constant -5.000000e-01 : f32
    %38 = vector.broadcast %cst_23 : f32 to vector<8x1xf32>
    %39 = arith.mulf %38, %37 : vector<8x1xf32>
    %40 = vector.shape_cast %39 : vector<8x1xf32> to vector<8x1xf32>
    %41 = vector.broadcast %40 : vector<8x1xf32> to vector<8x128xf32>
    %c0_24 = arith.constant 0 : index
    %c0_25 = arith.constant 0 : index
    %42 = vector.load %arg17[%c0_24, %c0_25] : memref<8x128xf32, #tpu.memory_space<vmem>>, vector<8x128xf32>
    tpu.vector_store %arg17[%c0_24, %c0_25], %41 {strides = array<i32>} : memref<8x128xf32, #tpu.memory_space<vmem>>, vector<8x128xf32>,
    %c0_26 = arith.constant 0 : index
    %43 = memref.load %arg1[%c0_26] : memref<1xi32, #tpu.memory_space<smem>>
    %c0_i32 = arith.constant 0 : i32
    %44 = arith.cmpi ne, %43, %c0_i32 : i32
    %c0_27 = arith.constant 0 : index
    %c0_28 = arith.constant 0 : index
    %45 = vector.load %arg3[%c0_27, %c0_28] : memref<8x128xbf16, #tpu.memory_space<vmem>>, vector<8x128xbf16>
    %46 = arith.extf %45 : vector<8x128xbf16> to vector<8x128xf32>
    %47 = arith.select %44, %28, %46 : vector<8x128xf32>
    %48 = arith.truncf %47 : vector<8x128xf32> to vector<8x128xbf16>
    %c0_29 = arith.constant 0 : index
    %c0_30 = arith.constant 0 : index
    %49 = vector.load %arg11[%c0_29, %c0_30] : memref<128x128xbf16, #tpu.memory_space<vmem>>, vector<128x128xbf16>
    %cst_31 = arith.constant dense<0.000000e+00> : vector<8x128xf32>
    %50 = tpu.matmul %48, %49, %cst_31 {dimension_numbers = #tpu.dot_dimension_numbers<[1], [0], [0], [1], [0, 0, 1, 1], [], []>} : vector<8x128xbf16>, vector<128x128xbf16>, vector<8x128xf32> -> vector<8x128xf32>
    %c0_32 = arith.constant 0 : index
    %c0_33 = arith.constant 0 : index
    %51 = vector.load %arg12[%c0_32, %c0_33] : memref<1x128xf32, #tpu.memory_space<vmem>>, vector<1x128xf32>
    %52 = vector.broadcast %51 : vector<1x128xf32> to vector<8x128xf32>
    %53 = arith.addf %50, %52 : vector<8x128xf32>
    %cst_34 = arith.constant 0.000000e+00 : f32
    %54 = vector.broadcast %cst_34 : f32 to vector<8x128xf32>
    %55 = arith.maximumf %53, %54 : vector<8x128xf32>
    %56 = arith.truncf %55 : vector<8x128xf32> to vector<8x128xbf16>
    %c0_35 = arith.constant 0 : index
    %c0_36 = arith.constant 0 : index
    %57 = vector.load %arg13[%c0_35, %c0_36] : memref<128x128xbf16, #tpu.memory_space<vmem>>, vector<128x128xbf16>
    %cst_37 = arith.constant dense<0.000000e+00> : vector<8x128xf32>
    %58 = tpu.matmul %56, %57, %cst_37 {dimension_numbers = #tpu.dot_dimension_numbers<[1], [0], [0], [1], [0, 0, 1, 1], [], []>} : vector<8x128xbf16>, vector<128x128xbf16>, vector<8x128xf32> -> vector<8x128xf32>
    %c0_38 = arith.constant 0 : index
    %c0_39 = arith.constant 0 : index
    %59 = vector.load %arg14[%c0_38, %c0_39] : memref<1x128xf32, #tpu.memory_space<vmem>>, vector<1x128xf32>
    %60 = vector.broadcast %59 : vector<1x128xf32> to vector<8x128xf32>
    %61 = arith.addf %58, %60 : vector<8x128xf32>
    %c0_40 = arith.constant 0 : index
    %c0_41 = arith.constant 0 : index
    %62 = vector.load %arg15[%c0_40, %c0_41] : memref<8x128xf32, #tpu.memory_space<vmem>>, vector<8x128xf32>
    tpu.vector_store %arg15[%c0_40, %c0_41], %61 {strides = array<i32>} : memref<8x128xf32, #tpu.memory_space<vmem>>, vector<8x128xf32>,
    return
  }
  func.func @transform_0(%arg0: i32, %arg1: memref<1xi32, #tpu.memory_space<smem>>) -> (i32, i32) {
    %c0_i32 = arith.constant 0 : i32
    %c0_i32_0 = arith.constant 0 : i32
    return %arg0, %c0_i32 : i32, i32
  }
  func.func @transform_1(%arg0: i32, %arg1: memref<1xi32, #tpu.memory_space<smem>>) -> (i32, i32) {
    %c0_i32 = arith.constant 0 : i32
    %c0_i32_0 = arith.constant 0 : i32
    return %arg0, %c0_i32 : i32, i32
  }
  func.func @transform_2(%arg0: i32, %arg1: memref<1xi32, #tpu.memory_space<smem>>) -> (i32, i32) {
    %c0_i32 = arith.constant 0 : i32
    %c0_i32_0 = arith.constant 0 : i32
    return %arg0, %c0_i32 : i32, i32
  }
  func.func @transform_3(%arg0: i32, %arg1: memref<1xi32, #tpu.memory_space<smem>>) -> (i32, i32) {
    %c0_i32 = arith.constant 0 : i32
    %c0_i32_0 = arith.constant 0 : i32
    %c0_i32_1 = arith.constant 0 : i32
    return %c0_i32, %c0_i32_0 : i32, i32
  }
  func.func @transform_4(%arg0: i32, %arg1: memref<1xi32, #tpu.memory_space<smem>>) -> (i32, i32) {
    %c0_i32 = arith.constant 0 : i32
    %c0_i32_0 = arith.constant 0 : i32
    %c0_i32_1 = arith.constant 0 : i32
    return %c0_i32, %c0_i32_0 : i32, i32
  }
  func.func @transform_5(%arg0: i32, %arg1: memref<1xi32, #tpu.memory_space<smem>>) -> (i32, i32) {
    %c0_i32 = arith.constant 0 : i32
    %c0_i32_0 = arith.constant 0 : i32
    %c0_i32_1 = arith.constant 0 : i32
    return %c0_i32, %c0_i32_0 : i32, i32
  }
  func.func @transform_6(%arg0: i32, %arg1: memref<1xi32, #tpu.memory_space<smem>>) -> (i32, i32) {
    %c0_i32 = arith.constant 0 : i32
    %c0_i32_0 = arith.constant 0 : i32
    %c0_i32_1 = arith.constant 0 : i32
    return %c0_i32, %c0_i32_0 : i32, i32
  }
  func.func @transform_7(%arg0: i32, %arg1: memref<1xi32, #tpu.memory_space<smem>>) -> (i32, i32) {
    %c0_i32 = arith.constant 0 : i32
    %c0_i32_0 = arith.constant 0 : i32
    %c0_i32_1 = arith.constant 0 : i32
    return %c0_i32, %c0_i32_0 : i32, i32
  }
  func.func @transform_8(%arg0: i32, %arg1: memref<1xi32, #tpu.memory_space<smem>>) -> (i32, i32) {
    %c0_i32 = arith.constant 0 : i32
    %c0_i32_0 = arith.constant 0 : i32
    %c0_i32_1 = arith.constant 0 : i32
    return %c0_i32, %c0_i32_0 : i32, i32
  }
  func.func @transform_9(%arg0: i32, %arg1: memref<1xi32, #tpu.memory_space<smem>>) -> (i32, i32) {
    %c0_i32 = arith.constant 0 : i32
    %c0_i32_0 = arith.constant 0 : i32
    %c0_i32_1 = arith.constant 0 : i32
    return %c0_i32, %c0_i32_0 : i32, i32
  }
  func.func @transform_10(%arg0: i32, %arg1: memref<1xi32, #tpu.memory_space<smem>>) -> (i32, i32) {
    %c0_i32 = arith.constant 0 : i32
    %c0_i32_0 = arith.constant 0 : i32
    %c0_i32_1 = arith.constant 0 : i32
    return %c0_i32, %c0_i32_0 : i32, i32
  }
  func.func @transform_11(%arg0: i32, %arg1: memref<1xi32, #tpu.memory_space<smem>>) -> (i32, i32) {
    %c0_i32 = arith.constant 0 : i32
    %c0_i32_0 = arith.constant 0 : i32
    %c0_i32_1 = arith.constant 0 : i32
    return %c0_i32, %c0_i32_0 : i32, i32
  }
  func.func @transform_12(%arg0: i32, %arg1: memref<1xi32, #tpu.memory_space<smem>>) -> (i32, i32) {
    %c0_i32 = arith.constant 0 : i32
    %c0_i32_0 = arith.constant 0 : i32
    %c0_i32_1 = arith.constant 0 : i32
    return %c0_i32, %c0_i32_0 : i32, i32
  }
  func.func @transform_13(%arg0: i32, %arg1: memref<1xi32, #tpu.memory_space<smem>>) -> (i32, i32) {
    %c0_i32 = arith.constant 0 : i32
    %c0_i32_0 = arith.constant 0 : i32
    return %arg0, %c0_i32 : i32, i32
  }
  func.func @transform_14(%arg0: i32, %arg1: memref<1xi32, #tpu.memory_space<smem>>) -> (i32, i32) {
    %c0_i32 = arith.constant 0 : i32
    %c0_i32_0 = arith.constant 0 : i32
    return %arg0, %c0_i32 : i32, i32
  }
  func.func @transform_15(%arg0: i32, %arg1: memref<1xi32, #tpu.memory_space<smem>>) -> (i32, i32) {
    %c0_i32 = arith.constant 0 : i32
    %c0_i32_0 = arith.constant 0 : i32
    return %arg0, %c0_i32 : i32, i32
  }
}

</mosaic_0001>

<bundles_post_ra>
// kernel: tpu_custom_call.1
= control target key start
LH: loop header
LB: loop body
LE: loop exit
PB: predicated region body
PF: predicated region fallthrough
CT: control target
= control target key end

     0   :  { %s2846_s0 = inlined_call_operand.<no memory space> [shape: s32[1], index: 0, kind: input, shape index: {}]   ;;  %s2847_s1 = inlined_call_operand.hbm [shape: bf16[16,128], index: 1, kind: input, shape index: {}]   ;;  %s2848_s2 = inlined_call_operand.hbm [shape: bf16[16,128], index: 2, kind: input, shape index: {}]   ;;  %s2849_s3 = inlined_call_operand.vmem [shape: bf16[16,128], index: 3, kind: input, shape index: {}]   ;;  %s2850_s4 = inlined_call_operand.hbm [shape: bf16[128,128], index: 4, kind: input, shape index: {}]   ;;  %s2851_s5 = inlined_call_operand.vmem [shape: f32[1,128], index: 5, kind: input, shape index: {}]   ;;  %s2852_s6 = inlined_call_operand.hbm [shape: bf16[128,256], index: 6, kind: input, shape index: {}]   ;;  %s2853_s7 = inlined_call_operand.vmem [shape: f32[1,256], index: 7, kind: input, shape index: {}]   ;;  %s2854_s8 = inlined_call_operand.hbm [shape: bf16[128,128], index: 8, kind: input, shape index: {}]   ;;  %s2855_s9 = inlined_call_operand.vmem [shape: f32[1,128], index: 9, kind: input, shape index: {}]   ;;  %s2856_s10 = inlined_call_operand.hbm [shape: bf16[128,128], index: 10, kind: input, shape index: {}]   ;;  %s2857_s11 = inlined_call_operand.vmem [shape: f32[1,128], index: 11, kind: input, shape index: {}]   ;;  %s2858_s12 = inlined_call_operand.hbm [shape: bf16[128,128], index: 12, kind: input, shape index: {}]   ;;  %s2859_s13 = inlined_call_operand.vmem [shape: f32[1,128], index: 13, kind: input, shape index: {}]   ;;  %s2860_s14 = inlined_call_operand.hbm [shape: f32[16,128], index: 14, kind: output, shape index: {0}]   ;;  %s2861_s15 = inlined_call_operand.hbm [shape: f32[16,128], index: 15, kind: output, shape index: {1}]   ;;  %s2862_s16 = inlined_call_operand.hbm [shape: f32[16,128], index: 16, kind: output, shape index: {2}]  }
   0x1   :  { %2873 = sst [smem:[#allocation27_spill]] %s2846_s0 }
   0x2   :  { %2874 = sst [smem:[#allocation28_spill]] %s2849_s3  ;;  %s2886_s23 = sld [smem:[#allocation27_spill]] }
   0x3   :  { %2875 = sst [smem:[#allocation29_spill]] %s2850_s4 }
   0x4   :  { %2876 = sst [smem:[#allocation30_spill]] %s2852_s6 }
   0x5   :  { %2877 = sst [smem:[#allocation31_spill]] %s2854_s8 }
   0x6   :  { %2878 = sst [smem:[#allocation32_spill]] %s2855_s9 }
   0x7   :  { %2879 = sst [smem:[#allocation33_spill]] %s2856_s10 }
   0x8   :  { %2880 = sst [smem:[#allocation34_spill]] %s2857_s11 }
   0x9   :  { %2881 = sst [smem:[#allocation35_spill]] %s2858_s12 }
   0xa   :  { %2882 = sst [smem:[#allocation36_spill]] %s2859_s13 }
   0xb   :  { %2883 = sst [smem:[#allocation37_spill]] %s2860_s14 }
   0xc   :  { %2884 = sst [smem:[#allocation38_spill]] %s2861_s15 }
   0xd   :  { %2885 = sst [smem:[#allocation39_spill]] %s2862_s16 }
   0xe   :  { %22 = sst [smem:[#allocation3]] %s2886_s23 }
   0xf   :  { %23 = vsyncpa [#allocation5], 0 }
  0x10   :  { %25 = vsyncpa [#allocation5 + $0x1], 0 }
  0x11   :  { %26 = vsyncpa [#allocation8], 0 }
  0x12   :  { %28 = vsyncpa [#allocation8 + $0x1], 0 }
  0x13   :  { %29 = vsyncpa [#allocation11], 0 }
  0x14   :  { %30 = vsyncpa [#allocation14], 0 }
  0x15   :  { %31 = vsyncpa [#allocation6], 0 }
  0x16   :  { %33 = vsyncpa [#allocation6 + $0x1], 0 }
  0x17   :  { %34 = vsyncpa [#allocation18], 0 }
  0x18   :  { %36 = vsyncpa [#allocation18 + $0x1], 0  ;;  %s2372_s24 = smov 0   ;;  %s2374_s25 = smov 0  }
  0x19   :  { %s2376_s26 = smov 0   ;;  %s2378_s27 = smov 0  }
  0x1a LB: > { %s2267_s28 = smov [#allocation9]   ;;  %s2393_s30 = sadd.s32 4294967295, %s2265_s27   ;;  %s2265_s27 = sphi %s2378_s27, %s2923_s27   ;;  %s2261_s26 = sphi %s2376_s26, %s2922_s26   ;;  %s2257_s25 = sphi %s2374_s25, %s2921_s25   ;;  %s2253_s24 = sphi %s2372_s24, %s2920_s24  }
  0x1b   : > { %s425_s29 = sshll.u32 %s2267_s28, 4  ;;  %p1547_p0 = scmp.ge.s32.totalorder %s2265_s27, 1  ;;  %s2398_s29 = int_to_ptr.vmem [resolvable:$true] %s425_s29 }
  0x1c   : > { %p2868_p1 = scmp.eq.s32.totalorder %s2393_s30, 0  ;;  %p413_p2 = scmp.lt.s32.totalorder %s2265_s27, 3 }
  0x1d   : > { %s2268_s17 = smov [#allocation10]   ;;  %s2269_s20 = smov [#allocation13]  }
  0x1e   : > { %p2400_p3 = pnand %p1547_p0, %p413_p2  ;;  %s441_s18 = sshll.u32 %s2268_s17, 4  ;;  %s2413_s18 = int_to_ptr.vmem [resolvable:$true] %s441_s18 }
  0x1f   : > { %s2415_s21 = sshll.u32 %s2269_s20, 4  ;;  %s2889_s4 = sld [smem:[#allocation29_spill]]  ;;  %s474_s21 = int_to_ptr.vmem [resolvable:$true] %s2415_s21 }
  0x20   : > { %s2887_s0 = scalar_select %p2400_p3, 1, 0 }
  0x21   : > { %p1776_p5 = pneg %p2400_p3 }
  0x23   : > { %p2409_p6 = pnand %p1776_p5, %p2868_p1 }
  0x25   : > { %s1923_s28 = scalar_lea.hbm %s2889_s4, 1024  ;;  %p2425_p8 = pneg %p2409_p6 }
  0x26   : > { %p1924_p7 = scmp.ne.s32.totalorder %s2889_s4, %s1923_s28  ;;  %p1930_p11 = scmp.lt.u32.totalorder %s1923_s28, %s2889_s4 }
  0x28   : > { %p1926_p9 = pnand %p2425_p8, %p1924_p7 }
  0x2a   : > { %p1927_p10 = pneg %p1926_p9 }
  0x2c   : > { %p1932_p12 = pnand %p1930_p11, %p1927_p10 }
  0x2e   : > { %1935 = shalt.err (!%p1932_p12)
}
  0x2f   : > { %s1936_s13 = scalar_lea.vmem %s2398_s29, 1024  ;;  %p1944_p5 = scmp.lt.s32.totalorder %s2398_s29, %s2398_s29 }
  0x30   : > { %p1937_p13 = scmp.ne.s32.totalorder %s2398_s29, %s1936_s13  ;;  %p1945_p4 = scmp.lt.s32.totalorder %s1936_s13, %s1936_s13 }
  0x32   : > { %p1939_p0 = pnand %p1937_p13, %p2425_p8  ;;  %p1946_p7 = por %p1945_p4, %p1944_p5 }
  0x34   : > { %p1940_p2 = pneg %p1939_p0 }
  0x36   : > { %p1947_p9 = pnand %p1946_p7, %p1940_p2 }
  0x38   : > { %1950 = shalt.err (!%p1947_p9)
}
  0x39   : > { %s2866_s14 = smov 64   ;;  %s2271_s16 = smov 4  }
  0x3a   : > { %1779 = dma.hbm_to_vmem [thread:$0]  (!%p2409_p6), %s2889_s4, 1024, %s2398_s29, [#allocation8], %s2866_s14, %s2866_s14, %s2271_s16  }
  0x3b   : > { %s2891_s6 = sld [smem:[#allocation30_spill]] }
  0x41   : > { %s1951_s13 = scalar_lea.hbm %s2891_s6, 2048 }
  0x42   : > { %p1952_p4 = scmp.ne.s32.totalorder %s2891_s6, %s1951_s13  ;;  %p1958_p12 = scmp.lt.u32.totalorder %s1951_s13, %s2891_s6 }
  0x44   : > { %p1954_p10 = pnand %p1952_p4, %p2425_p8 }
  0x46   : > { %p1955_p11 = pneg %p1954_p10 }
  0x48   : > { %p1960_p13 = pnand %p1958_p12, %p1955_p11 }
  0x4a   : > { %1963 = shalt.err (!%p1960_p13)
}
  0x4b   : > { %s1964_s29 = scalar_lea.vmem %s2413_s18, 2048  ;;  %p1972_p7 = scmp.lt.s32.totalorder %s2413_s18, %s2413_s18 }
  0x4c   : > { %p1965_p0 = scmp.ne.s32.totalorder %s2413_s18, %s1964_s29  ;;  %p1973_p9 = scmp.lt.s32.totalorder %s1964_s29, %s1964_s29 }
  0x4e   : > { %p1967_p2 = pnand %p1965_p0, %p2425_p8  ;;  %p1974_p4 = por %p1973_p9, %p1972_p7 }
  0x50   : > { %p1968_p5 = pneg %p1967_p2 }
  0x52   : > { %p1975_p10 = pnand %p1974_p4, %p1968_p5 }
  0x54   : > { %1978 = shalt.err (!%p1975_p10)
}
  0x55   : > { %s2272_s11 = smov 128   ;;  %s2273_s3 = smov 8  }
  0x56   : > { %1782 = dma.hbm_to_vmem [thread:$0]  (!%p2409_p6), %s2891_s6, 2048, %s2413_s18, [#allocation11], %s2272_s11, %s2272_s11, %s2273_s3  }
  0x57   : > { %s2892_s10 = sld [smem:[#allocation33_spill]] }
  0x5d   : > { %s1979_s28 = scalar_lea.hbm %s2892_s10, 1024 }
  0x5e   : > { %p1980_p11 = scmp.ne.s32.totalorder %s2892_s10, %s1979_s28  ;;  %p1986_p0 = scmp.lt.u32.totalorder %s1979_s28, %s2892_s10 }
  0x60   : > { %p1982_p12 = pnand %p1980_p11, %p2425_p8 }
  0x62   : > { %p1983_p13 = pneg %p1982_p12 }
  0x64   : > { %p1988_p2 = pnand %p1986_p0, %p1983_p13 }
  0x66   : > { %1991 = shalt.err (!%p1988_p2)
}
  0x67   : > { %s1992_s9 = scalar_lea.vmem %s474_s21, 1024  ;;  %p2000_p4 = scmp.lt.s32.totalorder %s474_s21, %s474_s21 }
  0x68   : > { %p1993_p5 = scmp.ne.s32.totalorder %s474_s21, %s1992_s9  ;;  %p2001_p10 = scmp.lt.s32.totalorder %s1992_s9, %s1992_s9 }
  0x6a   : > { %p1995_p7 = pnand %p1993_p5, %p2425_p8  ;;  %p2002_p1 = por %p2001_p10, %p2000_p4 }
  0x6c   : > { %p1996_p9 = pneg %p1995_p7 }
  0x6e   : > { %p2003_p3 = pnand %p2002_p1, %p1996_p9 }
  0x70   : > { %2006 = shalt.err (!%p2003_p3)
}
  0x71   : > { %s2893_s18 = smov 64   ;;  %s2274_s3 = smov [#allocation12]  }
  0x72   : > { %1788 = dma.hbm_to_vmem [thread:$0]  (!%p2409_p6), %s2892_s10, 1024, %s474_s21, [#allocation14], %s2893_s18, %s2893_s18, %s2271_s16  }
  0x73   : > { %s457_s15 = sshll.u32 %s2274_s3, 4  ;;  %s2275_s22 = smov [#allocation15]   ;;  %s458_s15 = int_to_ptr.vmem [resolvable:$true] %s457_s15 }
  0x74   : > { %s489_s23 = sshll.u32 %s2275_s22, 4  ;;  %s2894_s8 = sld [smem:[#allocation31_spill]]  ;;  %s490_s23 = int_to_ptr.vmem [resolvable:$true] %s489_s23 }
  0x7a   : > { %s2007_s13 = scalar_lea.hbm %s2894_s8, 1024 }
  0x7b   : > { %p2008_p1 = scmp.ne.s32.totalorder %s2894_s8, %s2007_s13  ;;  %p2014_p12 = scmp.lt.u32.totalorder %s2007_s13, %s2894_s8 }
  0x7d   : > { %p2010_p3 = pnand %p2008_p1, %p2425_p8 }
  0x7f   : > { %p2011_p11 = pneg %p2010_p3 }
  0x81   : > { %p2016_p13 = pnand %p2014_p12, %p2011_p11 }
  0x83   : > { %2019 = shalt.err (!%p2016_p13)
}
  0x84   : > { %s2020_s21 = scalar_lea.vmem %s458_s15, 1024  ;;  %p2028_p7 = scmp.lt.s32.totalorder %s458_s15, %s458_s15 }
  0x85   : > { %p2021_p0 = scmp.ne.s32.totalorder %s458_s15, %s2020_s21  ;;  %p2029_p9 = scmp.lt.s32.totalorder %s2020_s21, %s2020_s21 }
  0x87   : > { %p2023_p2 = pnand %p2021_p0, %p2425_p8  ;;  %p2030_p4 = por %p2029_p9, %p2028_p7 }
  0x89   : > { %p2024_p5 = pneg %p2023_p2 }
  0x8b   : > { %p2031_p10 = pnand %p2030_p4, %p2024_p5 }
  0x8d   : > { %2034 = shalt.err (!%p2031_p10)
}
  0x8e   : > { %1785 = dma.hbm_to_vmem [thread:$0]  (!%p2409_p6), %s2894_s8, 1024, %s458_s15, [#allocation11], %s2893_s18, %s2893_s18, %s2271_s16  }
  0x8f   : > { %s2895_s12 = sld [smem:[#allocation35_spill]] }
  0x95   : > { %s2035_s28 = scalar_lea.hbm %s2895_s12, 1024 }
  0x96   : > { %p2036_p1 = scmp.ne.s32.totalorder %s2895_s12, %s2035_s28  ;;  %p2042_p12 = scmp.lt.u32.totalorder %s2035_s28, %s2895_s12 }
  0x98   : > { %p2038_p3 = pnand %p2036_p1, %p2425_p8 }
  0x9a   : > { %p2039_p11 = pneg %p2038_p3 }
  0x9c   : > { %p2044_p13 = pnand %p2042_p12, %p2039_p11 }
  0x9e   : > { %2047 = shalt.err (!%p2044_p13)
}
  0x9f   : > { %s2048_s14 = scalar_lea.vmem %s490_s23, 1024  ;;  %p2056_p7 = scmp.lt.s32.totalorder %s490_s23, %s490_s23 }
  0xa0   : > { %p2049_p0 = scmp.ne.s32.totalorder %s490_s23, %s2048_s14  ;;  %p2057_p9 = scmp.lt.s32.totalorder %s2048_s14, %s2048_s14 }
  0xa2   : > { %p2051_p2 = pnand %p2049_p0, %p2425_p8  ;;  %p2058_p4 = por %p2057_p9, %p2056_p7 }
  0xa4   : > { %p2052_p5 = pneg %p2051_p2 }
  0xa6   : > { %p2059_p10 = pnand %p2058_p4, %p2052_p5 }
  0xa8   : > { %2062 = shalt.err (!%p2059_p10)
}
  0xa9   : > { %1791 = dma.hbm_to_vmem [thread:$0]  (!%p2409_p6), %s2895_s12, 1024, %s490_s23, [#allocation14], %s2893_s18, %s2893_s18, %s2271_s16  }
  0xaa   : > { %s2870_s19 = sadd.s32 4294967294, %s2265_s27   ;;  %s2538_s17 = sadd.s32 1, %s2265_s27  }
  0xab   : > { %s49_s4 = sadd.s32 1, %s2261_s26  ;;  %s46_s11 = ssub.s32 %s2265_s27, %s2538_s17 }
  0xac   : > { %p56_p8 = scmp.ne.s32.totalorder %s2261_s26, %s2257_s25  ;;  %p47_p1 = scmp.eq.s32.totalorder %s46_s11, 0 }
  0xad   : > { %p57_p3 = scmp.eq.s32.totalorder %s2265_s27, 0  ;;  %p62_p11 = scmp.ne.s32.totalorder %s2257_s25, %s2253_s24 }
  0xae   : > { %p348_p12 = scmp.eq.s32.totalorder %s2393_s30, 1  ;;  %p2896_p0 = scmp.eq.s32.totalorder %s2393_s30, 0 }
  0xaf   : > { %s2550_s3 = scalar_select %p47_p1, %s2261_s26, %s49_s4  }
  0xb0   : > { %p58_p13 = por %p57_p3, %p56_p8  ;;  %p2554_p2 = por %p2896_p0, %p62_p11 }
  0xb1   : > { %p2558_p6 = por %p348_p12, %p56_p8  ;;  %p354_p5 = scmp.eq.s32.totalorder %s2870_s19, 1 }
  0xb2   : > { %s2897_s22 = scalar_select %p2554_p2, 1, 0 }
  0xb3   : > { %s2898_s16 = scalar_select %p2558_p6, 1, 0 }
  0xb4   : > { %p1814_p7 = scmp.lt.s32.totalorder %s2265_s27, 2  ;;  %s506_s18 = sand.u32 1, %s2261_s26  }
  0xb5   : > { %p2566_p9 = por %p354_p5, %p62_p11  ;;  %s2570_s28 = sshll.u32 %s506_s18, 2 }
  0xb6   : > { %s1555_s20 = sshll.u32 %s2265_s27, 6  ;;  %s510_s14 = scalar_lea.vmem [#allocation4], %s2570_s28 }
  0xb7   : > { %s2899_s23 = scalar_select %p2566_p9, 1, 0 }
  0xb8   : > { %s2576_s9 = scalar_lea.hbm %s2847_s1, %s1555_s20  ;;  %s517_s15 = sshll.u32 %s510_s14, 4  ;;  %s2583_s15 = int_to_ptr.vmem [resolvable:$true] %s517_s15 }
  0xb9   : > { %p2579_p4 = pnand %p1814_p7, %p58_p13  ;;  %s2588_s13 = scalar_lea.hbm %s2848_s2, %s1555_s20 }
  0xba   : > { %s507_s29 = scalar_lea.sflag [#allocation5], %s506_s18  ;;  %s2063_s19 = scalar_lea.hbm %s2576_s9, 64 }
  0xbb   : > { %p2064_p10 = scmp.ne.s32.totalorder %s2576_s9, %s2063_s19  ;;  %p2065_p8 = pneg %p2579_p4 }
  0xbc   : > { %s2068_s8 = scalar_lea.hbm %s2847_s1, 128  ;;  %p2069_p11 = scmp.lt.u32.totalorder %s2576_s9, %s2847_s1 }
  0xbd   : > { %p2066_p1 = pnand %p2065_p8, %p2064_p10  ;;  %p2070_p12 = scmp.lt.u32.totalorder %s2068_s8, %s2063_s19 }
  0xbe   : > { %p2072_p0 = scmp.lt.u32.totalorder %s2063_s19, %s2576_s9 }
  0xbf   : > { %p2067_p3 = pneg %p2066_p1  ;;  %p2071_p13 = por %p2070_p12, %p2069_p11 }
  0xc1   : > { %p2073_p5 = por %p2072_p0, %p2071_p13 }
  0xc3   : > { %p2074_p7 = pnand %p2073_p5, %p2067_p3 }
  0xc5   : > { %2077 = shalt.err (!%p2074_p7)
}
  0xc6   : > { %s2078_s18 = scalar_lea.vmem %s2583_s15, 64  ;;  %s2276_s6 = smov [#allocation4]  }
  0xc7   : > { %p2079_p10 = scmp.ne.s32.totalorder %s2583_s15, %s2078_s18  ;;  %s2083_s20 = sshll.u32 %s2276_s6, 4  ;;  %s2084_s20 = int_to_ptr.vmem [resolvable:$false] %s2083_s20 }
  0xc8   : > { %s2085_s10 = scalar_lea.vmem %s2084_s20, 128  ;;  %p2086_p6 = scmp.lt.s32.totalorder %s2583_s15, %s2084_s20 }
  0xc9   : > { %p2081_p1 = pnand %p2079_p10, %p2065_p8  ;;  %p2087_p11 = scmp.lt.s32.totalorder %s2085_s10, %s2078_s18 }
  0xcb   : > { %p2082_p9 = pneg %p2081_p1  ;;  %p2088_p12 = por %p2087_p11, %p2086_p6 }
  0xcd   : > { %p2089_p13 = pnand %p2088_p12, %p2082_p9 }
  0xcf   : > { %2092 = shalt.err (!%p2089_p13)
}
  0xd0   : > { %1795 = dma.hbm_to_vmem [thread:$0]  (!%p2579_p4), %s2576_s9, 64, %s2583_s15, %s507_s29  }
  0xd1   : > { %s524_s8 = sand.u32 1, %s2265_s27   ;;  %s528_s12 = scalar_lea.vmem [#allocation7], %s2570_s28 }
  0xd2   : > { %s535_s19 = sshll.u32 %s528_s12, 4  ;;  %s525_s4 = scalar_lea.sflag [#allocation8], %s524_s8  ;;  %s536_s19 = int_to_ptr.vmem [resolvable:$true] %s535_s19 }
  0xd3   : > { %s2093_s11 = scalar_lea.hbm %s2588_s13, 64  ;;  %s2098_s6 = scalar_lea.hbm %s2848_s2, 128 }
  0xd4   : > { %p2094_p6 = scmp.ne.s32.totalorder %s2588_s13, %s2093_s11  ;;  %p2099_p0 = scmp.lt.u32.totalorder %s2588_s13, %s2848_s2 }
  0xd5   : > { %p2100_p5 = scmp.lt.u32.totalorder %s2098_s6, %s2093_s11  ;;  %p2102_p10 = scmp.lt.u32.totalorder %s2093_s11, %s2588_s13 }
  0xd6   : > { %p2096_p9 = pnand %p2094_p6, %p2065_p8 }
  0xd7   : > { %p2101_p7 = por %p2100_p5, %p2099_p0 }
  0xd8   : > { %p2097_p3 = pneg %p2096_p9 }
  0xd9   : > { %p2103_p1 = por %p2102_p10, %p2101_p7 }
  0xdb   : > { %p2104_p11 = pnand %p2103_p1, %p2097_p3 }
  0xdd   : > { %2107 = shalt.err (!%p2104_p11)
}
  0xde   : > { %s2108_s28 = scalar_lea.vmem %s536_s19, 64  ;;  %s2277_s9 = smov [#allocation7]  }
  0xdf   : > { %p2109_p12 = scmp.ne.s32.totalorder %s536_s19, %s2108_s28  ;;  %s2113_s15 = sshll.u32 %s2277_s9, 4  ;;  %s2114_s15 = int_to_ptr.vmem [resolvable:$false] %s2113_s15 }
  0xe0   : > { %s2115_s29 = scalar_lea.vmem %s2114_s15, 128  ;;  %p2116_p9 = scmp.lt.s32.totalorder %s536_s19, %s2114_s15 }
  0xe1   : > { %p2111_p13 = pnand %p2109_p12, %p2065_p8  ;;  %p2117_p2 = scmp.lt.s32.totalorder %s2115_s29, %s2108_s28 }
  0xe3   : > { %p2112_p6 = pneg %p2111_p13  ;;  %p2118_p0 = por %p2117_p2, %p2116_p9 }
  0xe5   : > { %p2119_p5 = pnand %p2118_p0, %p2112_p6 }
  0xe7   : > { %2122 = shalt.err (!%p2119_p5)
}
  0xe8   : > { %1798 = dma.hbm_to_vmem [thread:$0]  (!%p2579_p4), %s2588_s13, 64, %s536_s19, %s525_s4  }
  0xe9   : > { %p2901_p3 = scmp.ne.s32.totalorder %s2887_s0, 0 }
  0xea   : > { %s2639_s8 = sand.u32 (!%p2901_p3), 1, %s2257_s25   ;;  %p2902_p2 = scmp.ne.s32.totalorder (!%p2901_p3), %s2897_s22, 0 }
  0xeb   : > { %551 = sbr.rel (%p2901_p3) target bundleno = 1405 (0x57d), region = 72  ;;  %s1559_s12 = sshll.u32 (!%p2901_p3), %s2639_s8, 2 }
  0xec   : > { %s554_s11 = scalar_lea.sflag (!%p2901_p3), [#allocation5], %s2639_s8  ;;  %s2643_s14 = scalar_lea.vmem (!%p2901_p3), [#allocation4], %s1559_s12 }
  0xf2   : > { %2224 = dma.done.wait (%p2902_p2), %s554_s11, 64  }
  0xf3   : > { %2226 = vsyncadd (%p2902_p2), %s554_s11, 4294967232  ;;  %s562_s0 = sand.u32 1, %s2393_s30   ;;  %s2652_s13 = scalar_lea.vmem [#allocation7], %s1559_s12 }
  0xf4   : > { %s563_s21 = scalar_lea.sflag [#allocation8], %s562_s0 }
  0xf5   : > { %2228 = dma.done.wait (%p2902_p2), %s563_s21, 64  }
  0xf6   : > { %2230 = vsyncadd (%p2902_p2), %s563_s21, 4294967232  ;;  %p2903_p4 = scmp.eq.s32.totalorder %s2393_s30, 0 }
  0xf8   : > { %2232 = dma.done.wait (%p2903_p4), [#allocation8], 1024   ;;  %p2904_p8 = pmov %p2903_p4 }
  0xf9   : > { %p2905_p7 = pmov %p2903_p4 }
  0xfa   : > { %2234 = vsyncadd (%p2904_p8), [#allocation8], 4294966272 }
  0xfb   : > { %2236 = dma.done.wait (%p2905_p7), [#allocation11], 3072   ;;  %p2906_p10 = pmov %p2903_p4 }
  0xfc   : > { %p2907_p1 = pmov %p2903_p4 }
  0xfd   : > { %2238 = vsyncadd (%p2906_p10), [#allocation11], 4294964224 }
  0xfe   : > { %2240 = dma.done.wait (%p2907_p1), [#allocation14], 2048   ;;  %p2908_p11 = pmov %p2907_p1 }
  0xff   : > { %v2278_v0 = vmov 0.0   ;;  %vm2279_vm0 = vmmov 0   ;;  %v1865_v1 = vld [vmem:[#allocation9] sm:$0xff]   ;;  %v1866_v2 = vld [vmem:[#allocation9 + $0x8] sm:$0xff]   ;;  %v1867_v3 = vld [vmem:[#allocation9 + $0x10] sm:$0xff]   ;;  %v2280_v26 = vmov 0   ;;  %v789_v43 = vlaneseq }
 0x100   : > { %2242 = vsyncadd (%p2908_p11), [#allocation14], 4294965248  ;;  %1666 = vmatprep.subr.bf16.mxu0 %v2278_v0  ;;  %1682 = vmatprep.mubr.msk.bf16.mxu0 %vm2279_vm0, %v2278_v0  ;;  %v1873_v4 = vld [vmem:[#allocation10 + $0x4] ss:$8 sps:$4 sm:$0xff]   ;;  %v1875_v5 = vld [vmem:[#allocation10] ss:$8 sps:$4 sm:$0xff]  }
 0x101   : > { %1667 = vmatpush3.bf16.msra.mxu0 %v1865_v1  ;;  %v1868_v6 = vld [vmem:[#allocation9 + $0x18] sm:$0xff]   ;;  %879 = vmatprep.subr.bf16.mxu1 %v1873_v4  ;;  %v1879_v9 = vld [vmem:[#allocation10 + $0x24] ss:$8 sps:$4 sm:$0xff]   ;;  %v1881_v11 = vld [vmem:[#allocation10 + $0x20] ss:$8 sps:$4 sm:$0xff]   ;;  %v790_v44 = vshrl.u32 %v789_v43, 7 }
 0x102   : > { %1668 = vmatprep.subr.bf16.mxu0 %v2278_v0  ;;  %v1876_v7 = vld [vmem:[#allocation10 + $0x14] ss:$8 sps:$4 sm:$0xff]   ;;  %880 = vmatpush1.bf16.msra.mxu1 %v1875_v5  ;;  %v1878_v8 = vld [vmem:[#allocation10 + $0x10] ss:$8 sps:$4 sm:$0xff]   ;;  %v1869_v10 = vld [vmem:[#allocation9 + $0x20] sm:$0xff]   ;;  %p652_p12 = scmp.lt.s32.totalorder %s2393_s30, 1 }
 0x103   : > { %881 = vmatprep.subr.bf16.mxu1 %v1876_v7  ;;  %v1870_v12 = vld [vmem:[#allocation9 + $0x28] sm:$0xff]   ;;  %v1882_v13 = vld [vmem:[#allocation10 + $0x34] ss:$8 sps:$4 sm:$0xff]   ;;  %v1884_v14 = vld [vmem:[#allocation10 + $0x30] ss:$8 sps:$4 sm:$0xff]   ;;  %911 = vmatprep.mubr.bf16.mxu1 %v2280_v26  ;;  %v791_v45 = vsub.s32 0, %v790_v44 }
 0x104   : > { %v1885_v15 = vld [vmem:[#allocation10 + $0x44] ss:$8 sps:$4 sm:$0xff]   ;;  %v1871_v16 = vld [vmem:[#allocation9 + $0x30] sm:$0xff]   ;;  %v1887_v17 = vld [vmem:[#allocation10 + $0x40] ss:$8 sps:$4 sm:$0xff]   ;;  %v795_v47 = vsub.s32 1, %v790_v44 }
 0x105   : > { %1669 = vmatpush3.bf16.msra.mxu0 %v1866_v2  ;;  %v1888_v18 = vld [vmem:[#allocation10 + $0x54] ss:$8 sps:$4 sm:$0xff]   ;;  %v1890_v20 = vld [vmem:[#allocation10 + $0x50] ss:$8 sps:$4 sm:$0xff]   ;;  %v1891_v21 = vld [vmem:[#allocation10 + $0x64] ss:$8 sps:$4 sm:$0xff]  }
 0x106   : > { %1670 = vmatprep.subr.bf16.mxu0 %v2278_v0  ;;  %882 = vmatpush1.bf16.msra.mxu1 %v1878_v8  ;;  %v1872_v19 = vld [vmem:[#allocation9 + $0x38] sm:$0xff]   ;;  %v657_v22 = vld [vmem:[%s2643_s14] sm:$0xf]  ;;  %v1893_v23 = vld [vmem:[#allocation10 + $0x60] ss:$8 sps:$4 sm:$0xff]   ;;  %s653_s6 = scalar_select %p652_p12, %s2393_s30, 1 }
 0x107   : > { %883 = vmatprep.subr.bf16.mxu1 %v1879_v9  ;;  %v1894_v24 = vld [vmem:[#allocation10 + $0x74] ss:$8 sps:$4 sm:$0xff]   ;;  %v1896_v25 = vld [vmem:[#allocation10 + $0x70] ss:$8 sps:$4 sm:$0xff]   ;;  %v1897_v27 = vld [vmem:[#allocation12] sm:$0xff]   ;;  %s2909_s9 = sld [smem:[#allocation28_spill]] }
 0x108   : > { %v1898_v28 = vld [vmem:[#allocation12 + $0x8] sm:$0xff]   ;;  %v1570_v29 = vld [vmem:[%s2851_s5] ss:$0 sm:$0xff]  ;;  %v1900_v38 = vld [vmem:[#allocation12 + $0x18] sm:$0xff]   ;;  %s1569_s20 = sshll.u32 %s653_s6, 2  ;;  %s2722_s29 = sshll.u32 %s2639_s8, 3 }
 0x109   : > { %1671 = vmatpush3.bf16.msra.mxu0 %v1867_v3  ;;  %v1899_v37 = vld [vmem:[#allocation12 + $0x10] sm:$0xff]   ;;  %v1901_v39 = vld [vmem:[#allocation12 + $0x20] sm:$0xff]   ;;  %v1902_v40 = vld [vmem:[#allocation12 + $0x28] sm:$0xff]   ;;  %s651_s12 = scalar_lea.vmem [#allocation19], %s2722_s29  ;;  %s1049_s11 = sld [smem:[#allocation3]] }
 0x10a   : > { %1672 = vmatprep.subr.bf16.mxu0 %v2278_v0  ;;  %884 = vmatpush1.bf16.msra.mxu1 %v1881_v11  ;;  %v1903_v41 = vld [vmem:[#allocation12 + $0x30] sm:$0xff]   ;;  %v1904_v42 = vld [vmem:[#allocation12 + $0x38] sm:$0xff]   ;;  %v1906_v7 = vld [vmem:[#allocation13 + $0x8] sm:$0xff]   ;;  %s2910_s19 = sld [smem:[#allocation32_spill]]  ;;  %s644_s4 = scalar_lea.vmem [#allocation17], %s2722_s29 }
 0x10b   : > { %885 = vmatprep.subr.bf16.mxu1 %v1882_v13  ;;  %v787_v46 = vld [vmem:[%s2853_s7] sm:$0x3]  ;;  %v1908_v9 = vld [vmem:[#allocation13 + $0x18] sm:$0xff]   ;;  %v1910_v11 = vld [vmem:[#allocation13 + $0x28] sm:$0xff]   ;;  %s2911_s6 = sld [smem:[#allocation34_spill]]  ;;  %s2739_s10 = sshll.u32 %s2393_s30, 7 }
 0x10c   : > { %v792_v48 = vrot.slane %v787_v46, %v791_v45  ;;  %v796_v49 = vrot.slane %v787_v46, %v795_v47  ;;  %v1907_v8 = vld [vmem:[#allocation13 + $0x10] sm:$0xff]   ;;  %v1912_v13 = vld [vmem:[#allocation13 + $0x38] sm:$0xff]   ;;  %s1320_s28 = sshll.u32 %s644_s4, 4  ;;  %s2751_s21 = scalar_lea.sflag [#allocation18], %s562_s0  ;;  %s1321_s28 = int_to_ptr.vmem [resolvable:$true] %s1320_s28 }
 0x10d   : > { %1673 = vmatpush3.bf16.msra.mxu0 %v1868_v6  ;;  %s655_s15 = scalar_lea.vmem %s2909_s9, %s1569_s20  ;;  %v1905_v6 = vld [vmem:[#allocation13] sm:$0xff]   ;;  %s1333_s20 = sshll.u32 %s651_s12, 4  ;;  %s2747_s20 = int_to_ptr.vmem [resolvable:$true] %s1333_s20 }
 0x10e   : > { %1674 = vmatprep.subr.bf16.mxu0 %v2278_v0  ;;  %886 = vmatpush1.bf16.msra.mxu1 %v1884_v14  ;;  %v923_v61 = vld [vmem:[%s655_s15] sm:$0xf]  ;;  %v1913_v14 = vld [vmem:[#allocation15] sm:$0xff]   ;;  %s2123_s22 = scalar_lea.vmem %s1321_s28, 128  ;;  %p2913_p9 = scmp.ne.s32.totalorder %s2898_s16, 0 }
 0x10f   : > { %887 = vmatprep.subr.bf16.mxu1 %v1885_v15  ;;  %v924_v62 = vunpack.c.l.bf16 %v923_v61  ;;  %v1914_v15 = vld [vmem:[#allocation15 + $0x8] sm:$0xff]   ;;  %p1050_p13 = scmp.ne.s32.totalorder %s1049_s11, 0  ;;  %s2912_s11 = sld [smem:[#allocation38_spill]] }
 0x110   : > { %p2124_p6 = scmp.ne.s32.totalorder %s1321_s28, %s2123_s22 }
 0x111   : > { %1675 = vmatpush3.bf16.msra.mxu0 %v1869_v10  ;;  %v1909_v10 = vld [vmem:[#allocation13 + $0x20] sm:$0xff]   ;;  %s1053_s14 = scalar_select %p1050_p13, 1, 0 }
 0x112   : > { %1676 = vmatprep.subr.bf16.mxu0 %v2278_v0  ;;  %888 = vmatpush1.bf16.msra.mxu1 %v1887_v17  ;;  %v1916_v17 = vld [vmem:[#allocation15 + $0x18] sm:$0xff]   ;;  %p2125_p0 = pnand %p2124_p6, %p2913_p9 }
 0x113   : > { %889 = vmatprep.subr.bf16.mxu1 %v1888_v18  ;;  %v1917_v18 = vld [vmem:[#allocation15 + $0x20] sm:$0xff]  }
 0x114   : > { %p2126_p5 = pneg %p2125_p0 }
 0x115   : > { %1677 = vmatpush3.bf16.msra.mxu0 %v1870_v12  ;;  %v1911_v12 = vld [vmem:[#allocation13 + $0x30] sm:$0xff]  }
 0x116   : > { %1678 = vmatprep.subr.bf16.mxu0 %v2278_v0  ;;  %890 = vmatpush1.bf16.msra.mxu1 %v1890_v20 }
 0x117   : > { %891 = vmatprep.subr.bf16.mxu1 %v1891_v21 }
 0x119   : > { %1679 = vmatpush3.bf16.msra.mxu0 %v1871_v16  ;;  %v1915_v16 = vld [vmem:[#allocation15 + $0x10] sm:$0xff]  }
 0x11a   : > { %1680 = vmatprep.subr.bf16.mxu0 %v2278_v0  ;;  %892 = vmatpush1.bf16.msra.mxu1 %v1893_v23  ;;  %v1054_v23 = vstv %s1053_s14  ;;  %s2745_s14 = scalar_lea.hbm %s2912_s11, %s2739_s10 }
 0x11b   : > { %893 = vmatprep.subr.bf16.mxu1 %v1894_v24  ;;  %v1595_v24 = vld [vmem:[%s2910_s19] ss:$0 sm:$0xff]  ;;  %vm1055_vm1 = vcmp.eq.s32.totalorder %v1054_v23, 1 }
 0x11d   : > { %1681 = vmatpush3.bf16.msra.mxu0 %v1872_v19  ;;  %v1918_v19 = vld [vmem:[#allocation15 + $0x28] sm:$0xff]  }
 0x11e   : > { %1686 = vmatprep.subr.bf16.mxu0 %v2278_v0  ;;  %894 = vmatpush1.bf16.msra.mxu1 %v1896_v25 }
 0x11f   : > { %1706 = vmatprep.subr.bf16.mxu1 %v2278_v0 }
 0x120   : > { %1683 = vmatmul.mubr.bf16.vlgmr.msra.gmra.mrb[0].mxu0 %v657_v22  ;;  %v1051_v22 = vld [vmem:[%s2652_s13] sm:$0xf] }
 0x121   : > { %1702 = vmatprep.mubr.msk.bf16.mxu0 %vm2279_vm0, %v2278_v0  ;;  %1687 = vmatpush3.bf16.msra.mxu0 %v1897_v27  ;;  %v1052_v25 = vunpack.c.l.bf16 %v1051_v22 }
 0x122   : > { %1688 = vmatprep.subr.bf16.mxu0 %v2278_v0 }
 0x125   : > { %1689 = vmatpush3.bf16.msra.mxu0 %v1898_v28 }
 0x126   : > { %1690 = vmatprep.subr.bf16.mxu0 %v2278_v0 }
 0x129   : > { %1691 = vmatpush3.bf16.msra.mxu0 %v1899_v37 }
 0x12a   : > { %1692 = vmatprep.subr.bf16.mxu0 %v2278_v0 }
 0x12d   : > { %1693 = vmatpush3.bf16.msra.mxu0 %v1900_v38 }
 0x12e   : > { %1694 = vmatprep.subr.bf16.mxu0 %v2278_v0 }
 0x131   : > { %1695 = vmatpush3.bf16.msra.mxu0 %v1901_v39 }
 0x132   : > { %1696 = vmatprep.subr.bf16.mxu0 %v2278_v0 }
 0x135   : > { %1697 = vmatpush3.bf16.msra.mxu0 %v1902_v40 }
 0x136   : > { %1698 = vmatprep.subr.bf16.mxu0 %v2278_v0 }
 0x139   : > { %1699 = vmatpush3.bf16.msra.mxu0 %v1903_v41 }
 0x13a   : > { %1700 = vmatprep.subr.bf16.mxu0 %v2278_v0 }
 0x13d   : > { %1701 = vmatpush3.bf16.msra.mxu0 %v1904_v42 }
 0x13e   : > { %1726 = vmatprep.subr.bf16.mxu0 %v2278_v0 }
 0x1f3   : > { %v763_v30 = vpop.f32.mrb[0].mxu0 }
 0x1f4   : > { %v764_v31 = vadd.f32 %v1570_v29, %v763_v30  ;;  %v1684_v32 = vpop.f32.mrb[1].mxu0 }
 0x1f5   : > { %v766_v33 = vpop.f32.mrb[2].mxu0 }
 0x1f6   : > { %v769_v34 = vmax.f32 %v764_v31, 0.0  ;;  %v1685_v35 = vpop.f32.mrb[3].mxu0  ;;  %v1919_v33 = vld [vmem:[#allocation15 + $0x30] sm:$0xff]  }
 0x1f7   : > { %v1604_v35 = vld [vmem:[%s2911_s6] ss:$0 sm:$0xff] }
 0x1f8   : > { %v770_v36 = vpack.c.bf16 %v769_v34, %v769_v34  ;;  %v1920_v34 = vld [vmem:[#allocation15 + $0x38] sm:$0xff]  }
 0x1fa   : > { %912 = vmatmul.mubr.bf16.vlgmr.msra.gmra.mrb[0].mxu1 %v770_v36 }
 0x1fb   : > { %1722 = vmatprep.mubr.msk.bf16.mxu1 %vm2279_vm0, %v2278_v0  ;;  %1707 = vmatpush3.bf16.msra.mxu1 %v1905_v6 }
 0x1fc   : > { %1708 = vmatprep.subr.bf16.mxu1 %v2278_v0 }
 0x1ff   : > { %1709 = vmatpush3.bf16.msra.mxu1 %v1906_v7 }
 0x200   : > { %1710 = vmatprep.subr.bf16.mxu1 %v2278_v0 }
 0x203   : > { %1711 = vmatpush3.bf16.msra.mxu1 %v1907_v8 }
 0x204   : > { %1712 = vmatprep.subr.bf16.mxu1 %v2278_v0 }
 0x207   : > { %1713 = vmatpush3.bf16.msra.mxu1 %v1908_v9 }
 0x208   : > { %1714 = vmatprep.subr.bf16.mxu1 %v2278_v0 }
 0x20b   : > { %1715 = vmatpush3.bf16.msra.mxu1 %v1909_v10 }
 0x20c   : > { %1716 = vmatprep.subr.bf16.mxu1 %v2278_v0 }
 0x20f   : > { %1717 = vmatpush3.bf16.msra.mxu1 %v1910_v11 }
 0x210   : > { %1718 = vmatprep.subr.bf16.mxu1 %v2278_v0 }
 0x213   : > { %1719 = vmatpush3.bf16.msra.mxu1 %v1911_v12 }
 0x214   : > { %1720 = vmatprep.subr.bf16.mxu1 %v2278_v0 }
 0x217   : > { %1721 = vmatpush3.bf16.msra.mxu1 %v1912_v13 }
 0x2cd   : > { %v913_v50 = vpop.f32.mrb[0].mxu1 }
 0x2ce   : > { %v914_v51 = vadd.f32 %v913_v50, %v792_v48  ;;  %v915_v52 = vpop.f32.mrb[1].mxu1 }
 0x2cf   : > { %v916_v53 = vadd.f32 %v915_v52, %v796_v49  ;;  %v917_v54 = vpop.f32.mrb[2].mxu1 }
 0x2d0   : > { %v1041_v55 = vmul.f32 %v914_v51, %v914_v51  ;;  %v918_v56 = vpop.f32.mrb[3].mxu1 }
 0x2d1   : > { %v920_v57 = vmul.f32 0.5, %v916_v53  ;;  %v1040_v58 = vadd.f32 1.0, %v916_v53 }
 0x2d3   : > { %v921_v59 = vmul.f32 1.442695, %v920_v57  ;;  %v1042_v60 = vsub.f32 %v1040_v58, %v1041_v55 }
 0x2d5   : > { %1921 = vpow2.f32 %v921_v59 }
 0x2df   : > { %v1922_v63 = vpop.eup %1921 }
 0x2e0   : > { %v1043_v1 = vmul.f32 %v1922_v63, %v1922_v63  ;;  %v925_v2 = vmul.f32 %v1922_v63, %v924_v62 }
 0x2e2   : > { %v1044_v3 = vsub.f32 %v1042_v60, %v1043_v1  ;;  %v926_v4 = vadd.f32 %v925_v2, %v914_v51 }
 0x2e4   : > { %1045 = vadd.xlane.f32.xlu0 %v1044_v3  ;;  %v927_v5 = vpack.c.bf16 %v926_v4, %v926_v4 }
 0x2e6   : > { %1703 = vmatmul.mubr.bf16.vlgmr.msra.gmra.mrb[4].mxu0 %v927_v5 }
 0x2e7   : > { %1742 = vmatprep.mubr.msk.bf16.mxu0 %vm2279_vm0, %v2278_v0  ;;  %1727 = vmatpush3.bf16.msra.mxu0 %v1913_v14 }
 0x2e8   : > { %1728 = vmatprep.subr.bf16.mxu0 %v2278_v0 }
 0x2eb   : > { %1729 = vmatpush3.bf16.msra.mxu0 %v1914_v15 }
 0x2ec   : > { %1730 = vmatprep.subr.bf16.mxu0 %v2278_v0 }
 0x2ef   : > { %1731 = vmatpush3.bf16.msra.mxu0 %v1915_v16 }
 0x2f0   : > { %1732 = vmatprep.subr.bf16.mxu0 %v2278_v0 }
 0x2f3   : > { %1733 = vmatpush3.bf16.msra.mxu0 %v1916_v17 }
 0x2f4   : > { %1734 = vmatprep.subr.bf16.mxu0 %v2278_v0 }
 0x2f7   : > { %1735 = vmatpush3.bf16.msra.mxu0 %v1917_v18 }
 0x2f8   : > { %1736 = vmatprep.subr.bf16.mxu0 %v2278_v0 }
 0x2fb   : > { %1737 = vmatpush3.bf16.msra.mxu0 %v1918_v19 }
 0x2fc   : > { %1738 = vmatprep.subr.bf16.mxu0 %v2278_v0 }
 0x2ff   : > { %1739 = vmatpush3.bf16.msra.mxu0 %v1919_v33 }
 0x300   : > { %1740 = vmatprep.subr.bf16.mxu0 %v2278_v0 }
 0x303   : > { %1741 = vmatpush3.bf16.msra.mxu0 %v1920_v34 }
 0x371   : > { %v1046_v20 = vpop.xlane.xlu0 %1045 }
 0x372   : > { %v1047_v21 = vmul.f32 -0.5, %v1046_v20 }
 0x374   : > { %1048 = vst [vmem:[%s651_s12] sm:$0xff] %v1047_v21  ;;  %s2281_s12 = smov [#allocation17]  }
 0x375   : > { %s2127_s19 = sshll.u32 %s2281_s12, 4  ;;  %s2128_s19 = int_to_ptr.vmem [resolvable:$false] %s2127_s19 }
 0x376   : > { %p2130_p3 = scmp.lt.s32.totalorder %s1321_s28, %s2128_s19 }
 0x3b9   : > { %v1033_v26 = vpop.f32.mrb[4].mxu0 }
 0x3ba   : > { %v1034_v27 = vadd.f32 %v1595_v24, %v1033_v26  ;;  %v1704_v28 = vpop.f32.mrb[5].mxu0 }
 0x3bb   : > { %v1036_v29 = vpop.f32.mrb[6].mxu0 }
 0x3bc   : > { %1039 = vst [vmem:[%s644_s4] sm:$0xff] %v1034_v27  ;;  %v1056_v30 = vsel %vm1055_vm1, %v1034_v27, %v1052_v25  ;;  %v1705_v31 = vpop.f32.mrb[7].mxu0  ;;  %s2129_s4 = scalar_lea.vmem %s2128_s19, 256 }
 0x3bd   : > { %v1057_v32 = vpack.c.bf16 %v1056_v30, %v1056_v30  ;;  %p2131_p2 = scmp.lt.s32.totalorder %s2129_s4, %s2123_s22 }
 0x3bf   : > { %1723 = vmatmul.mubr.bf16.vlgmr.msra.gmra.mrb[4].mxu1 %v1057_v32  ;;  %p2132_p4 = por %p2131_p2, %p2130_p3 }
 0x3c1   : > { %p2133_p8 = pnand %p2132_p4, %p2126_p5 }
 0x492   : > { %v1163_v36 = vpop.f32.mrb[4].mxu1 }
 0x493   : > { %v1164_v37 = vadd.f32 %v1604_v35, %v1163_v36  ;;  %v1724_v38 = vpop.f32.mrb[5].mxu1 }
 0x494   : > { %v1166_v39 = vpop.f32.mrb[6].mxu1 }
 0x495   : > { %v1169_v40 = vmax.f32 %v1164_v37, 0.0  ;;  %v1725_v41 = vpop.f32.mrb[7].mxu1 }
 0x497   : > { %v1170_v42 = vpack.c.bf16 %v1169_v40, %v1169_v40 }
 0x499   : > { %1743 = vmatmul.mubr.bf16.vlgmr.msra.gmra.mrb[8].mxu0 %v1170_v42 }
 0x49a   : > { %2136 = shalt.err (!%p2133_p8)
}
 0x49b   : > { %s2137_s30 = scalar_lea.hbm %s2745_s14, 128  ;;  %s2141_s18 = scalar_lea.hbm %s2912_s11, 256 }
 0x49c   : > { %p2138_p7 = scmp.ne.s32.totalorder %s2745_s14, %s2137_s30  ;;  %p2142_p11 = scmp.lt.u32.totalorder %s2745_s14, %s2912_s11 }
 0x49d   : > { %p2143_p12 = scmp.lt.u32.totalorder %s2141_s18, %s2137_s30  ;;  %p2145_p6 = scmp.lt.u32.totalorder %s2137_s30, %s2745_s14 }
 0x49e   : > { %p2139_p10 = pnand %p2138_p7, %p2913_p9 }
 0x49f   : > { %p2144_p13 = por %p2143_p12, %p2142_p11 }
 0x4a0   : > { %p2140_p1 = pneg %p2139_p10 }
 0x4a1   : > { %p2146_p0 = por %p2145_p6, %p2144_p13 }
 0x4a3   : > { %p2147_p5 = pnand %p2146_p0, %p2140_p1 }
 0x4a5   : > { %2150 = shalt.err (!%p2147_p5)
}
 0x4a6   : > { %1771 = dma.vmem_to_hbm [thread:$0]  (%p2913_p9), %s1321_s28, 128, %s2745_s14, %s2751_s21  }
 0x4a7   : > { %s2914_s12 = sld [smem:[#allocation39_spill]]  ;;  %s2151_s4 = scalar_lea.vmem %s2747_s20, 128 }
 0x4a8   : > { %p2152_p3 = scmp.ne.s32.totalorder %s2747_s20, %s2151_s4  ;;  %s2282_s30 = smov [#allocation19]  }
 0x4a9   : > { %s2155_s0 = sshll.u32 %s2282_s30, 4  ;;  %s2156_s0 = int_to_ptr.vmem [resolvable:$false] %s2155_s0 }
 0x4aa   : > { %p2153_p2 = pnand %p2152_p3, %p2913_p9  ;;  %s2157_s13 = scalar_lea.vmem %s2156_s0, 256 }
 0x4ab   : > { %p2158_p8 = scmp.lt.s32.totalorder %s2747_s20, %s2156_s0  ;;  %p2159_p7 = scmp.lt.s32.totalorder %s2157_s13, %s2151_s4 }
 0x4ac   : > { %p2154_p4 = pneg %p2153_p2 }
 0x4ad   : > { %s1331_s19 = scalar_lea.hbm %s2914_s12, %s2739_s10  ;;  %p2160_p10 = por %p2159_p7, %p2158_p8 }
 0x4af   : > { %p2161_p1 = pnand %p2160_p10, %p2154_p4 }
 0x4b1   : > { %2164 = shalt.err (!%p2161_p1)
}
 0x4b2   : > { %s2165_s18 = scalar_lea.hbm %s1331_s19, 128  ;;  %s2169_s6 = scalar_lea.hbm %s2914_s12, 256 }
 0x4b3   : > { %p2166_p11 = scmp.ne.s32.totalorder %s1331_s19, %s2165_s18  ;;  %p2170_p6 = scmp.lt.u32.totalorder %s1331_s19, %s2914_s12 }
 0x4b4   : > { %p2171_p0 = scmp.lt.u32.totalorder %s2169_s6, %s2165_s18  ;;  %p2173_p3 = scmp.lt.u32.totalorder %s2165_s18, %s1331_s19 }
 0x4b5   : > { %p2167_p12 = pnand %p2166_p11, %p2913_p9 }
 0x4b6   : > { %p2172_p5 = por %p2171_p0, %p2170_p6 }
 0x4b7   : > { %p2168_p13 = pneg %p2167_p12 }
 0x4b8   : > { %p2174_p2 = por %p2173_p3, %p2172_p5 }
 0x4ba   : > { %p2175_p4 = pnand %p2174_p2, %p2168_p13 }
 0x4bc   : > { %2178 = shalt.err (!%p2175_p4)
}
 0x4bd   : > { %1772 = dma.vmem_to_hbm [thread:$0]  (%p2913_p9), %s2747_s20, 128, %s1331_s19, %s2751_s21  }
 0x4be   : > { %s2915_s30 = sld [smem:[#allocation36_spill]]  ;;  %s637_s0 = scalar_lea.vmem [#allocation16], %s2722_s29 }
 0x4bf   : > { %s1307_s13 = sshll.u32 %s637_s0, 4  ;;  %s2916_s14 = sld [smem:[#allocation37_spill]]  ;;  %s2802_s13 = int_to_ptr.vmem [resolvable:$true] %s1307_s13 }
 0x4c0   : > { %s1284_s20 = scalar_lea.sflag [#allocation6], %s2639_s8  ;;  %s2179_s21 = scalar_lea.vmem %s2802_s13, 128 }
 0x4c1   : > { %p2180_p8 = scmp.ne.s32.totalorder %s2802_s13, %s2179_s21  ;;  %s2283_s29 = smov [#allocation16]  }
 0x4c2   : > { %s2183_s19 = sshll.u32 %s2283_s29, 4  ;;  %s2184_s19 = int_to_ptr.vmem [resolvable:$false] %s2183_s19 }
 0x4c3   : > { %p2181_p7 = pnand %p2180_p8, %p2913_p9  ;;  %s2185_s9 = scalar_lea.vmem %s2184_s19, 256 }
 0x4c4   : > { %v1613_v0 = vld [vmem:[%s2915_s30] ss:$0 sm:$0xff]  ;;  %p2186_p1 = scmp.lt.s32.totalorder %s2802_s13, %s2184_s19  ;;  %p2187_p11 = scmp.lt.s32.totalorder %s2185_s9, %s2179_s21 }
 0x4c5   : > { %s2800_s6 = scalar_lea.hbm %s2916_s14, %s2739_s10  ;;  %p2182_p10 = pneg %p2181_p7 }
 0x4c6   : > { %p2188_p12 = por %p2187_p11, %p2186_p1 }
 0x4c8   : > { %p2189_p13 = pnand %p2188_p12, %p2182_p10 }
 0x56c   : > { %v1276_v43 = vpop.f32.mrb[8].mxu0 }
 0x56d   : > { %v1277_v44 = vadd.f32 %v1613_v0, %v1276_v43  ;;  %v1744_v45 = vpop.f32.mrb[9].mxu0 }
 0x56e   : > { %v1279_v46 = vpop.f32.mrb[10].mxu0 }
 0x56f   : > { %1282 = vst [vmem:[%s637_s0] sm:$0xff] %v1277_v44  ;;  %v1745_v47 = vpop.f32.mrb[11].mxu0 }
 0x570   : > { %2192 = shalt.err (!%p2189_p13)
}
 0x571   : > { %s2193_s8 = scalar_lea.hbm %s2800_s6, 128  ;;  %s2197_s22 = scalar_lea.hbm %s2916_s14, 256 }
 0x572   : > { %p2194_p6 = scmp.ne.s32.totalorder %s2800_s6, %s2193_s8  ;;  %p2198_p3 = scmp.lt.u32.totalorder %s2800_s6, %s2916_s14 }
 0x573   : > { %p2199_p2 = scmp.lt.u32.totalorder %s2197_s22, %s2193_s8  ;;  %p2201_p8 = scmp.lt.u32.totalorder %s2193_s8, %s2800_s6 }
 0x574   : > { %p2195_p0 = pnand %p2194_p6, %p2913_p9 }
 0x575   : > { %p2200_p4 = por %p2199_p2, %p2198_p3 }
 0x576   : > { %p2196_p5 = pneg %p2195_p0 }
 0x577   : > { %p2202_p7 = por %p2201_p8, %p2200_p4 }
 0x579   : > { %p2203_p10 = pnand %p2202_p7, %p2196_p5 }
 0x57b   : > { %2206 = shalt.err (!%p2203_p10)
}
 0x57c   : > { %1770 = dma.vmem_to_hbm [thread:$0]  (%p2913_p9), %s2802_s13, 128, %s2800_s6, %s1284_s20  }
 0x57d PF: > { %s1345_s0 = sand.u32 1, %s2253_s24   ;;  %p2917_p1 = scmp.ne.s32.totalorder %s2899_s23, 0 }
 0x57e   : > { %p2918_p11 = scmp.ge.s32.totalorder %s2265_s27, 2  ;;  %s1346_s18 = scalar_lea.sflag [#allocation6], %s1345_s0 }
 0x580   : > { %p1800_p12 = pnand %p2918_p11, %p2917_p1 }
 0x582   : > { %2244 = dma.done.wait (!%p1800_p12), %s1346_s18, 128  }
 0x583   : > { %2246 = vsyncadd (!%p1800_p12), %s1346_s18, 4294967168  ;;  %s2919_s28 = sadd.s32 4294967294, %s2265_s27  }
 0x584   : > { %s1354_s21 = sand.u32 1, %s2919_s28  }
 0x585   : > { %s1355_s29 = scalar_lea.sflag [#allocation18], %s1354_s21 }
 0x586   : > { %2248 = dma.done.wait (!%p1800_p12), %s1355_s29, 256  }
 0x587   : > { %2250 = vsyncadd (!%p1800_p12), %s1355_s29, 4294967040  ;;  %p39_p9 = scmp.ge.s32.totalorder %s2538_s17, 4   ;;  %s2920_s24 = smov %s2257_s25 }
 0x588   : > { %s2921_s25 = smov %s2261_s26  ;;  %s2922_s26 = smov %s2550_s3 }
 0x589   : > { %s2923_s27 = smov %s2538_s17  ;;  %41 = sbr.rel (!%p39_p9) target bundleno = 26 (0x1a), region = 185 }
 0x590   :  { %1369 = vsyncpa [#allocation5], 1 }
 0x591   :  { %1371 = vsyncpa [#allocation5 + $0x1], 1 }
 0x592   :  { %1372 = vsyncpa [#allocation8], 1 }
 0x593   :  { %1374 = vsyncpa [#allocation8 + $0x1], 1 }
 0x594   :  { %1375 = vsyncpa [#allocation11], 1 }
 0x595   :  { %1376 = vsyncpa [#allocation14], 1 }
 0x596   :  { %1377 = vsyncpa [#allocation6], 1 }
 0x597   :  { %1379 = vsyncpa [#allocation6 + $0x1], 1 }
 0x598   :  { %1380 = vsyncpa [#allocation18], 1 }
 0x599   :  { %1382 = vsyncpa [#allocation18 + $0x1], 1 }

</bundles_post_ra>
